<compile_context>
chip_gen: v7x
topology: tpu7x:2x2x1
jax: 0.10.0
libtpu: 0.0.40
codegen_flags: <defaults>
</compile_context>

<pallas_src>
import functools

import jax
import jax.numpy as jnp
from jax import lax
from jax.experimental import pallas as pl
from jax.experimental.pallas import tpu as pltpu

_LANE = 128


def _budgets():
    """(vmem_limit_bytes, per-tile byte budget), generation aware."""
    vmem_cap = None
    try:
        info = pltpu.get_tpu_info()
        vmem_cap = getattr(info, "vmem_capacity_bytes", None)
    except Exception:
        vmem_cap = None
    if vmem_cap is not None and vmem_cap >= 96 * 1024 * 1024:
        # v5e / v6e: 128 MiB physical VMEM -> big tiles, generous scoped limit.
        return 96 * 1024 * 1024, 6 * 1024 * 1024
    # v7x (64 MiB physical VMEM) or unknown: stay conservative.
    return 40 * 1024 * 1024, 5 * 1024 * 1024 // 2  # 2.5 MiB tiles


def _largest_divisor_leq(n, cap):
    cap = max(1, min(n, cap))
    for d in range(cap, 0, -1):
        if n % d == 0:
            return d
    return 1


def _plan(N, C, HW, tile_budget_bytes):
    """Pick (BN, TC, TM, GPI) and the grid (nc, nn, nhw).

    Budgeting is done at 4 B/element so bf16 inputs (which are upcast to f32
    inside the kernels) never overshoot the intended VMEM footprint.
    """
    TC = C if C <= 128 else 128
    nc = pl.cdiv(C, TC)

    lane_groups_total = pl.cdiv(HW, _LANE)
    bytes_per_group = TC * _LANE * 4
    max_groups = max(1, tile_budget_bytes // bytes_per_group)
    tm_groups = min(lane_groups_total, max_groups)

    # Groups per inner-loop iteration: keep the loaded strip ~<= 64 KiB.
    gpi = max(1, min(8, 128 // TC, tm_groups))
    tm_groups = max(gpi, (tm_groups // gpi) * gpi)
    TM = tm_groups * _LANE
    nhw = pl.cdiv(HW, TM)

    # Batch samples per block when HW is small (amortize per-step overhead).
    tile_bytes = TC * TM * 4
    bn_cap = max(1, min(64, tile_budget_bytes // tile_bytes))
    BN = _largest_divisor_leq(N, bn_cap)
    nn = N // BN
    return BN, TC, TM, gpi, nc, nn, nhw


def _make_stats_kernel(HW, TM, BN, TC, GPI):
    """Returns kernel(x_ref, acc_ref):
       x_ref:  (BN, TC, TM) input tile
       acc_ref:(2, TC, 128) f32 lane-packed sum / sum-of-squares accumulator,
               resident in VMEM across the n / hw-tile (reduction) grid axes.
    """
    CW = GPI * _LANE
    iters_per_sample = TM // CW
    total = BN * iters_per_sample
    mask_needed = (HW % TM) != 0  # only then can a block extend past HW

    def kernel(x_ref, acc_ref):
        n_i = pl.program_id(1)
        t_i = pl.program_id(2)

        @pl.when((n_i == 0) & (t_i == 0))
        def _():
            acc_ref[...] = jnp.zeros_like(acc_ref)

        if mask_needed:
            lane_iota = lax.broadcasted_iota(jnp.int32, (TC, _LANE), 1)
            tile_base = t_i * TM

        def step(b, j, s, ss):
            off = j * CW
            if not isinstance(off, int):
                off = pl.multiple_of(off, _LANE)
            strip = x_ref[b, :, pl.ds(off, CW)].astype(jnp.float32)  # (TC, CW)
            for g in range(GPI):
                xc = strip[:, g * _LANE:(g + 1) * _LANE]
                if mask_needed:
                    m = (tile_base + off + g * _LANE + lane_iota) < HW
                    xc = jnp.where(m, xc, 0.0)
                s = s + xc
                ss = ss + xc * xc
            return s, ss

        zeros = jnp.zeros((TC, _LANE), jnp.float32)
        if total <= 8:
            s, ss = zeros, zeros
            for k in range(total):
                s, ss = step(k // iters_per_sample, k % iters_per_sample, s, ss)
        else:
            def body(k, carry):
                return step(k // iters_per_sample, k % iters_per_sample, *carry)
            s, ss = lax.fori_loop(0, total, body, (zeros, zeros))

        acc_ref[0, :, :] = acc_ref[0, :, :] + s
        acc_ref[1, :, :] = acc_ref[1, :, :] + ss

    return kernel


def _affine_kernel(x_ref, scale_ref, bias_ref, o_ref):
    """Fused per-channel scale-and-shift: out = x * scale + bias.
    x_ref/o_ref: (BN, TC, TM).  scale_ref/bias_ref: (TC, 1)."""
    x = x_ref[...].astype(jnp.float32)
    scale = scale_ref[...][None, :, :]   # (1, TC, 1): broadcast over lanes/BN
    bias = bias_ref[...][None, :, :]
    o_ref[...] = (x * scale + bias).astype(o_ref.dtype)


@functools.partial(jax.jit, static_argnames=("eps", "momentum", "training"))
def batchnorm2d_forward(x, gamma, beta, running_mean, running_var,
                        eps=1e-5, momentum=0.1, training=True):
    """BatchNorm2d forward.  x: (N, C, H, W).
    Returns (out, new_running_mean, new_running_var)."""
    N, C, H, W = x.shape
    HW = H * W
    M = N * HW

    x3 = x.reshape(N, C, HW)                      # free reshape (contiguous)
    vmem_limit, tile_budget = _budgets()
    BN, TC, TM, GPI, nc, nn, nhw = _plan(N, C, HW, tile_budget)

    gamma_f = gamma.astype(jnp.float32)
    beta_f = beta.astype(jnp.float32)

    if training:
        stats_kernel = _make_stats_kernel(HW, TM, BN, TC, GPI)
        stats = pl.pallas_call(
            stats_kernel,
            out_shape=jax.ShapeDtypeStruct((2, C, _LANE), jnp.float32),
            grid=(nc, nn, nhw),
            in_specs=[pl.BlockSpec((BN, TC, TM), lambda c, n, t: (n, c, t))],
            out_specs=pl.BlockSpec((2, TC, _LANE), lambda c, n, t: (0, c, 0)),
            compiler_params=pltpu.CompilerParams(
                dimension_semantics=("parallel", "arbitrary", "arbitrary"),
                vmem_limit_bytes=vmem_limit),
        )(x3)

        # Tiny final reduction: (2, C, 128) -> (C,), done in plain JAX.
        sums = stats[0].sum(axis=-1)
        sumsq = stats[1].sum(axis=-1)
        mean = sums / M
        var = jnp.maximum(sumsq / M - mean * mean, 0.0)   # biased (population)

        bessel = M / (M - 1) if M > 1 else 1.0            # guard M == 1
        new_running_mean = ((1.0 - momentum) * running_mean
                            + momentum * mean).astype(running_mean.dtype)
        new_running_var = ((1.0 - momentum) * running_var
                           + momentum * (bessel * var)).astype(running_var.dtype)
    else:
        mean = running_mean.astype(jnp.float32)
        var = running_var.astype(jnp.float32)
        new_running_mean = running_mean
        new_running_var = running_var

    # Fold mean/var/gamma/beta into a per-channel scale & bias (C elements).
    inv_std = lax.rsqrt(var + eps)
    scale = (gamma_f * inv_std).reshape(C, 1)
    bias = (beta_f - mean * gamma_f * inv_std).reshape(C, 1)

    out3 = pl.pallas_call(
        _affine_kernel,
        out_shape=jax.ShapeDtypeStruct((N, C, HW), x.dtype),
        grid=(nc, nn, nhw),
        in_specs=[
            pl.BlockSpec((BN, TC, TM), lambda c, n, t: (n, c, t)),
            pl.BlockSpec((TC, 1), lambda c, n, t: (c, 0)),
            pl.BlockSpec((TC, 1), lambda c, n, t: (c, 0)),
        ],
        out_specs=pl.BlockSpec((BN, TC, TM), lambda c, n, t: (n, c, t)),
        compiler_params=pltpu.CompilerParams(
            dimension_semantics=("parallel", "parallel", "parallel"),
            vmem_limit_bytes=vmem_limit),
    )(x3, scale, bias)

    out = out3.reshape(N, C, H, W)
    return out, new_running_mean, new_running_var


if __name__ == "__main__":
    key = jax.random.PRNGKey(0)
    N, C, H, W = 2, 4, 16, 16
    eps, momentum = 1e-5, 0.1

    x = jax.random.normal(key, (N, C, H, W), dtype=jnp.float32)

    # Parameter / buffer init matching the module's __init__.
    gamma = jnp.ones((C,), dtype=jnp.float32)
    beta = jnp.zeros((C,), dtype=jnp.float32)
    running_mean = jnp.zeros((C,), dtype=jnp.float32)
    running_var = jnp.ones((C,), dtype=jnp.float32)

    # ---- training mode ----
    out, new_rm, new_rv = batchnorm2d_forward(
        x, gamma, beta, running_mean, running_var,
        eps=eps, momentum=momentum, training=True)
    jax.block_until_ready((out, new_rm, new_rv))

    mean_ref = x.mean(axis=(0, 2, 3))
    var_ref = x.var(axis=(0, 2, 3))                       # biased
    ref = (gamma[None, :, None, None]
           * (x - mean_ref[None, :, None, None])
           / jnp.sqrt(var_ref[None, :, None, None] + eps)
           + beta[None, :, None, None])
    m = N * H * W
    rm_ref = (1 - momentum) * running_mean + momentum * mean_ref
    rv_ref = (1 - momentum) * running_var + momentum * (m / (m - 1) * var_ref)

    assert out.shape == x.shape and out.dtype == x.dtype
    assert jnp.allclose(out, ref, atol=1e-4, rtol=1e-4)
    assert jnp.allclose(new_rm, rm_ref, atol=1e-5, rtol=1e-5)
    assert jnp.allclose(new_rv, rv_ref, atol=1e-5, rtol=1e-5)

    # ---- eval mode (uses running stats, elementwise-only kernel) ----
    out_e, _, _ = batchnorm2d_forward(
        x, gamma, beta, new_rm, new_rv,
        eps=eps, momentum=momentum, training=False)
    jax.block_until_ready(out_e)
    ref_e = (gamma[None, :, None, None]
             * (x - new_rm[None, :, None, None])
             / jnp.sqrt(new_rv[None, :, None, None] + eps)
             + beta[None, :, None, None])
    assert jnp.allclose(out_e, ref_e, atol=1e-4, rtol=1e-4)

    print("KERNEL_OK")
</pallas_src>

<mosaic_0001>
module attributes {stable_mosaic.version = 11 : i64} {
  func.func @kernel(%arg0: i32, %arg1: i32, %arg2: i32, %arg3: memref<2x4x256xf32, #tpu.memory_space<vmem>>, %arg4: memref<2x4x128xf32, #tpu.memory_space<vmem>>) attributes {dimension_semantics = [#tpu.dimension_semantics<parallel>, #tpu.dimension_semantics<arbitrary>, #tpu.dimension_semantics<arbitrary>], iteration_bounds = array<i64: 1, 1, 1>, scalar_prefetch = 0 : i64, scratch_operands = 0 : i64, tpu.core_type = #tpu.core_type<tc>, window_params = [{transform_indices = @transform_0, window_bounds = array<i64: 2, 4, 256>}, {transform_indices = @transform_1, window_bounds = array<i64: 2, 4, 128>}]} {
    %c0_i32 = arith.constant 0 : i32
    %0 = arith.cmpi eq, %arg1, %c0_i32 : i32
    %c0_i32_0 = arith.constant 0 : i32
    %1 = arith.cmpi eq, %arg2, %c0_i32_0 : i32
    %2 = arith.andi %0, %1 : i1
    %3 = arith.extui %2 : i1 to i32
    %c0_i32_1 = arith.constant 0 : i32
    %4 = arith.cmpi ne, %3, %c0_i32_1 : i32
    scf.if %4 {
      %cst_18 = arith.constant 0.000000e+00 : f32
      %38 = vector.broadcast %cst_18 : f32 to vector<2x4x128xf32>
      %c0_19 = arith.constant 0 : index
      %c0_20 = arith.constant 0 : index
      %c0_21 = arith.constant 0 : index
      %39 = vector.load %arg4[%c0_19, %c0_20, %c0_21] : memref<2x4x128xf32, #tpu.memory_space<vmem>>, vector<2x4x128xf32>
      tpu.vector_store %arg4[%c0_19, %c0_20, %c0_21], %38 {strides = array<i32>} : memref<2x4x128xf32, #tpu.memory_space<vmem>>, vector<2x4x128xf32>,
    } else {
    }
    %cst = arith.constant 0.000000e+00 : f32
    %5 = vector.broadcast %cst : f32 to vector<4x128xf32>
    %c0 = arith.constant 0 : index
    %c0_2 = arith.constant 0 : index
    %c0_3 = arith.constant 0 : index
    %6 = vector.load %arg3[%c0, %c0_2, %c0_3] : memref<2x4x256xf32, #tpu.memory_space<vmem>>, vector<1x4x256xf32>
    %7 = vector.shape_cast %6 : vector<1x4x256xf32> to vector<4x256xf32>
    %8 = vector.extract_strided_slice %7 {offsets = [0, 0], sizes = [4, 128], strides = [1, 1]} : vector<4x256xf32> to vector<4x128xf32>
    %9 = arith.addf %5, %8 : vector<4x128xf32>
    %10 = arith.mulf %8, %8 : vector<4x128xf32>
    %11 = arith.addf %5, %10 : vector<4x128xf32>
    %12 = vector.extract_strided_slice %7 {offsets = [0, 128], sizes = [4, 128], strides = [1, 1]} : vector<4x256xf32> to vector<4x128xf32>
    %13 = arith.addf %9, %12 : vector<4x128xf32>
    %14 = arith.mulf %12, %12 : vector<4x128xf32>
    %15 = arith.addf %11, %14 : vector<4x128xf32>
    %c1 = arith.constant 1 : index
    %c0_4 = arith.constant 0 : index
    %c0_5 = arith.constant 0 : index
    %16 = vector.load %arg3[%c1, %c0_4, %c0_5] : memref<2x4x256xf32, #tpu.memory_space<vmem>>, vector<1x4x256xf32>
    %17 = vector.shape_cast %16 : vector<1x4x256xf32> to vector<4x256xf32>
    %18 = vector.extract_strided_slice %17 {offsets = [0, 0], sizes = [4, 128], strides = [1, 1]} : vector<4x256xf32> to vector<4x128xf32>
    %19 = arith.addf %13, %18 : vector<4x128xf32>
    %20 = arith.mulf %18, %18 : vector<4x128xf32>
    %21 = arith.addf %15, %20 : vector<4x128xf32>
    %22 = vector.extract_strided_slice %17 {offsets = [0, 128], sizes = [4, 128], strides = [1, 1]} : vector<4x256xf32> to vector<4x128xf32>
    %23 = arith.addf %19, %22 : vector<4x128xf32>
    %24 = arith.mulf %22, %22 : vector<4x128xf32>
    %25 = arith.addf %21, %24 : vector<4x128xf32>
    %c0_6 = arith.constant 0 : index
    %c0_7 = arith.constant 0 : index
    %c0_8 = arith.constant 0 : index
    %26 = vector.load %arg4[%c0_6, %c0_7, %c0_8] : memref<2x4x128xf32, #tpu.memory_space<vmem>>, vector<1x4x128xf32>
    %27 = vector.shape_cast %26 : vector<1x4x128xf32> to vector<4x128xf32>
    %28 = arith.addf %27, %23 : vector<4x128xf32>
    %c0_9 = arith.constant 0 : index
    %c0_10 = arith.constant 0 : index
    %c0_11 = arith.constant 0 : index
    %29 = vector.load %arg4[%c0_9, %c0_10, %c0_11] : memref<2x4x128xf32, #tpu.memory_space<vmem>>, vector<1x4x128xf32>
    %30 = vector.shape_cast %29 : vector<1x4x128xf32> to vector<4x128xf32>
    %31 = vector.shape_cast %28 : vector<4x128xf32> to vector<1x4x128xf32>
    tpu.vector_store %arg4[%c0_9, %c0_10, %c0_11], %31 {strides = array<i32>} : memref<2x4x128xf32, #tpu.memory_space<vmem>>, vector<1x4x128xf32>,
    %c1_12 = arith.constant 1 : index
    %c0_13 = arith.constant 0 : index
    %c0_14 = arith.constant 0 : index
    %32 = vector.load %arg4[%c1_12, %c0_13, %c0_14] : memref<2x4x128xf32, #tpu.memory_space<vmem>>, vector<1x4x128xf32>
    %33 = vector.shape_cast %32 : vector<1x4x128xf32> to vector<4x128xf32>
    %34 = arith.addf %33, %25 : vector<4x128xf32>
    %c1_15 = arith.constant 1 : index
    %c0_16 = arith.constant 0 : index
    %c0_17 = arith.constant 0 : index
    %35 = vector.load %arg4[%c1_15, %c0_16, %c0_17] : memref<2x4x128xf32, #tpu.memory_space<vmem>>, vector<1x4x128xf32>
    %36 = vector.shape_cast %35 : vector<1x4x128xf32> to vector<4x128xf32>
    %37 = vector.shape_cast %34 : vector<4x128xf32> to vector<1x4x128xf32>
    tpu.vector_store %arg4[%c1_15, %c0_16, %c0_17], %37 {strides = array<i32>} : memref<2x4x128xf32, #tpu.memory_space<vmem>>, vector<1x4x128xf32>,
    return
  }
  func.func @transform_0(%arg0: i32, %arg1: i32, %arg2: i32) -> (i32, i32, i32) {
    %c0_i32 = arith.constant 0 : i32
    return %arg1, %arg0, %arg2 : i32, i32, i32
  }
  func.func @transform_1(%arg0: i32, %arg1: i32, %arg2: i32) -> (i32, i32, i32) {
    %c0_i32 = arith.constant 0 : i32
    %c0_i32_0 = arith.constant 0 : i32
    %c0_i32_1 = arith.constant 0 : i32
    return %c0_i32, %arg0, %c0_i32_0 : i32, i32, i32
  }
}

module attributes {stable_mosaic.version = 11 : i64} {
  func.func @_affine_kernel(%arg0: i32, %arg1: i32, %arg2: i32, %arg3: memref<2x4x256xf32, #tpu.memory_space<vmem>>, %arg4: memref<4x1xf32, #tpu.memory_space<vmem>>, %arg5: memref<4x1xf32, #tpu.memory_space<vmem>>, %arg6: memref<2x4x256xf32, #tpu.memory_space<vmem>>) attributes {dimension_semantics = [#tpu.dimension_semantics<parallel>, #tpu.dimension_semantics<parallel>, #tpu.dimension_semantics<parallel>], iteration_bounds = array<i64: 1, 1, 1>, scalar_prefetch = 0 : i64, scratch_operands = 0 : i64, tpu.core_type = #tpu.core_type<tc>, window_params = [{transform_indices = @transform_0, window_bounds = array<i64: 2, 4, 256>}, {transform_indices = @transform_1, window_bounds = array<i64: 4, 1>}, {transform_indices = @transform_2, window_bounds = array<i64: 4, 1>}, {transform_indices = @transform_3, window_bounds = array<i64: 2, 4, 256>}]} {
    %c0 = arith.constant 0 : index
    %c0_0 = arith.constant 0 : index
    %c0_1 = arith.constant 0 : index
    %0 = vector.load %arg3[%c0, %c0_0, %c0_1] : memref<2x4x256xf32, #tpu.memory_space<vmem>>, vector<2x4x256xf32>
    %c0_2 = arith.constant 0 : index
    %c0_3 = arith.constant 0 : index
    %1 = vector.load %arg4[%c0_2, %c0_3] : memref<4x1xf32, #tpu.memory_space<vmem>>, vector<4x1xf32>
    %2 = vector.shape_cast %1 : vector<4x1xf32> to vector<1x4x1xf32>
    %c0_4 = arith.constant 0 : index
    %c0_5 = arith.constant 0 : index
    %3 = vector.load %arg5[%c0_4, %c0_5] : memref<4x1xf32, #tpu.memory_space<vmem>>, vector<4x1xf32>
    %4 = vector.shape_cast %3 : vector<4x1xf32> to vector<1x4x1xf32>
    %5 = vector.broadcast %2 : vector<1x4x1xf32> to vector<2x4x256xf32>
    %6 = arith.mulf %0, %5 : vector<2x4x256xf32>
    %7 = vector.broadcast %4 : vector<1x4x1xf32> to vector<2x4x256xf32>
    %8 = arith.addf %6, %7 : vector<2x4x256xf32>
    %c0_6 = arith.constant 0 : index
    %c0_7 = arith.constant 0 : index
    %c0_8 = arith.constant 0 : index
    %9 = vector.load %arg6[%c0_6, %c0_7, %c0_8] : memref<2x4x256xf32, #tpu.memory_space<vmem>>, vector<2x4x256xf32>
    tpu.vector_store %arg6[%c0_6, %c0_7, %c0_8], %8 {strides = array<i32>} : memref<2x4x256xf32, #tpu.memory_space<vmem>>, vector<2x4x256xf32>,
    return
  }
  func.func @transform_0(%arg0: i32, %arg1: i32, %arg2: i32) -> (i32, i32, i32) {
    %c0_i32 = arith.constant 0 : i32
    return %arg1, %arg0, %arg2 : i32, i32, i32
  }
  func.func @transform_1(%arg0: i32, %arg1: i32, %arg2: i32) -> (i32, i32) {
    %c0_i32 = arith.constant 0 : i32
    %c0_i32_0 = arith.constant 0 : i32
    return %arg0, %c0_i32 : i32, i32
  }
  func.func @transform_2(%arg0: i32, %arg1: i32, %arg2: i32) -> (i32, i32) {
    %c0_i32 = arith.constant 0 : i32
    %c0_i32_0 = arith.constant 0 : i32
    return %arg0, %c0_i32 : i32, i32
  }
  func.func @transform_3(%arg0: i32, %arg1: i32, %arg2: i32) -> (i32, i32, i32) {
    %c0_i32 = arith.constant 0 : i32
    return %arg1, %arg0, %arg2 : i32, i32, i32
  }
}

</mosaic_0001>

<bundles_post_ra>
// kernel: batchnorm2d_forward.2
= control target key start
LH: loop header
LB: loop body
LE: loop exit
PB: predicated region body
PF: predicated region fallthrough
CT: control target
= control target key end

     0   :  { %v52_v0 = vmov 0.0   ;;  %s87_s1 = inlined_call_operand.vmem [shape: f32[2,4,128], index: 1, kind: output, shape index: {}]   ;;  %s88_s0 = inlined_call_operand.vmem [shape: f32[2,4,256], index: 0, kind: input, shape index: {}]  }
   0x1   :  { %14 = vst [vmem:[%s87_s1] sm:$0xf] %v52_v0  ;;  %15 = vst [vmem:[%s87_s1 + $0x4] sm:$0xf] %v52_v0  ;;  %v16_v1 = vld [vmem:[%s88_s0] sm:$0xff]  ;;  %v48_v2 = vld [vmem:[%s88_s0 + $0x8] sm:$0xff] }
   0x2   :  { %v21_v3 = vrot.slane %v16_v1, 4  ;;  %v32_v4 = vrot.slane %v48_v2, 4  ;;  %v18_v5 = vmul.f32 %v16_v1, %v16_v1  ;;  %v29_v8 = vmul.f32 %v48_v2, %v48_v2 }
   0x4   :  { %v23_v6 = vadd.f32 %v21_v3, %v16_v1  ;;  %v24_v7 = vmul.f32 %v21_v3, %v21_v3  ;;  %v35_v11 = vmul.f32 %v32_v4, %v32_v4 }
   0x6   :  { %v28_v9 = vadd.f32 %v48_v2, %v23_v6  ;;  %v25_v10 = vadd.f32 %v24_v7, %v18_v5 }
   0x8   :  { %v34_v12 = vadd.f32 %v32_v4, %v28_v9  ;;  %v37_v13 = vld [vmem:[%s87_s1] sm:$0xf]  ;;  %v30_v14 = vadd.f32 %v29_v8, %v25_v10  ;;  %v49_v15 = vld [vmem:[%s87_s1 + $0x4] sm:$0xf] }
   0xa   :  { %v38_v16 = vadd.f32 %v37_v13, %v34_v12  ;;  %v36_v17 = vadd.f32 %v35_v11, %v30_v14 }
   0xc   :  { %39 = vst [vmem:[%s87_s1] sm:$0xf] %v38_v16  ;;  %v42_v18 = vadd.f32 %v49_v15, %v36_v17 }
   0xe   :  { %50 = vst [vmem:[%s87_s1 + $0x4] sm:$0xf] %v42_v18 }

// kernel: batchnorm2d_forward.3
= control target key start
LH: loop header
LB: loop body
LE: loop exit
PB: predicated region body
PF: predicated region fallthrough
CT: control target
= control target key end

     0   :  { %v55_v0 = vmov 0   ;;  %v56_v3 = vmov 839922192   ;;  %v25_v5 = vlaneseq  ;;  %s95_s1 = inlined_call_operand.vmem [shape: f32[4,1], index: 1, kind: input, shape index: {}]   ;;  %s96_s2 = inlined_call_operand.vmem [shape: f32[4,1], index: 2, kind: input, shape index: {}]   ;;  %s97_s0 = inlined_call_operand.vmem [shape: f32[2,4,256], index: 0, kind: input, shape index: {}]   ;;  %s98_s3 = inlined_call_operand.vmem [shape: f32[2,4,256], index: 3, kind: output, shape index: {}]  }
   0x1   :  { %54 = vset.pattern.permute.xlu0 %v55_v0  ;;  %v16_v1 = vld [vmem:[%s95_s1] sm:$0xf]  ;;  %v23_v4 = vunpack.c.l.s4 %v56_v3  ;;  %v15_v12 = vld [vmem:[%s97_s0 + $0x8] sm:$0xff] }
   0x2   :  { %20 = vperm.xlu0 %54, %v16_v1   ;;  %v17_v2 = vld [vmem:[%s96_s2] sm:$0xf]  ;;  %v26_v7 = vshrl.u32 %v25_v5, 7 }
   0x3   :  { %v24_v6 = vunpack.c.0.s8 %v23_v4  ;;  %v14_v11 = vld [vmem:[%s97_s0] sm:$0xff] }
   0x5   :  { %v27_v8 = vsub.s32 %v24_v6, %v26_v7 }
   0x6   :  { %34 = vperm.xlu0 %54, %v17_v2  }
  0x81   :  { %v21_v9 = vpop.permute.xlu0 %20 }
  0x82   :  { %v28_v10 = vrot.slane %v21_v9, %v27_v8 }
  0x84   :  { %v30_v14 = vmul.f32 %v28_v10, %v14_v11  ;;  %v31_v15 = vmul.f32 %v28_v10, %v15_v12 }
  0x85   :  { %v35_v13 = vpop.permute.xlu0 %34 }
  0x86   :  { %v42_v16 = vrot.slane %v35_v13, %v27_v8 }
  0x88   :  { %v44_v17 = vadd.f32 %v42_v16, %v30_v14  ;;  %v45_v18 = vadd.f32 %v42_v16, %v31_v15 }
  0x8a   :  { %46 = vst [vmem:[%s98_s3] sm:$0xff] %v44_v17  ;;  %47 = vst [vmem:[%s98_s3 + $0x8] sm:$0xff] %v45_v18 }

</bundles_post_ra>
